<compile_context>
chip_gen: v7x
topology: tpu7x:2x2x1
jax: 0.10.0
libtpu: 0.0.40
codegen_flags: <defaults>
</compile_context>

<pallas_src>
import jax
import jax.numpy as jnp
from jax import lax
from jax.experimental import pallas as pl
from jax.experimental.pallas import tpu as pltpu


_CLIP = 999.0 / 1000.0


def _cos_kernel(out_ref, tgt_ref, cos_ref):
    """One (tile_n, D) row tile -> one (1, 1, tile_n) lane-dense cosine row."""
    o = out_ref[...]
    t = tgt_ref[...]

    # Fused normalization: cos = <o,t> / (||o|| * ||t||) as a single per-row
    # rsqrt instead of two full-tile broadcast divides + an extra multiply.
    dot = jnp.sum(o * t, axis=-1)      # (tile_n,)
    oo = jnp.sum(o * o, axis=-1)       # (tile_n,)
    tt = jnp.sum(t * t, axis=-1)       # (tile_n,)
    cos = dot * lax.rsqrt(oo * tt)

    # torch: cos[cos > .999] = .999 ; cos[cos < -.999] = -.999
    cos = jnp.clip(cos, -_CLIP, _CLIP)

    # Lane-dense store (full-width vst, not width-1 masked stores).
    cos_ref[...] = cos.reshape(cos_ref.shape)


def _round_up(x, m):
    return ((x + m - 1) // m) * m


def _pick_tile_n(n, d, target_tile_bytes=2 * 1024 * 1024):
    """Rows per tile so each f32 input tile is ~target_tile_bytes."""
    rows = target_tile_bytes // (d * 4)
    if rows >= 128:
        rows = (rows // 128) * 128     # keep the output row a multiple of 128 lanes
    else:
        rows = max(8, (rows // 8) * 8)
    rows = min(rows, _round_up(n, 8))  # never (much) bigger than the problem
    return max(8, int(rows))


def cos_loss(outputs, targets, *, tile_n=None):
    """Pallas implementation of CosLoss.forward for 2-D (N, D) inputs."""
    assert outputs.shape == targets.shape and outputs.ndim == 2
    n, d = outputs.shape

    outputs = outputs.astype(jnp.float32)
    targets = targets.astype(jnp.float32)

    if tile_n is None:
        tile_n = _pick_tile_n(n, d)
    assert tile_n > 0 and tile_n % 8 == 0

    # TODO(synk): for D < 128 (e.g. D=32) only D/128 of the vector lanes carry
    # data; packing 128//D rows per vreg row with a segmented lane reduction
    # would recover lane utilization (HBM traffic is already dense, so this
    # only matters once the kernel stops being DMA-bound).

    # Pad N so the grid divides evenly; padded rows are all-ones (non-zero
    # norm -> no NaN) and are sliced off before arccos.
    n_pad = _round_up(n, tile_n)
    if n_pad != n:
        pad = ((0, n_pad - n), (0, 0))
        outputs = jnp.pad(outputs, pad, constant_values=1.0)
        targets = jnp.pad(targets, pad, constant_values=1.0)

    num_tiles = n_pad // tile_n

    cos = pl.pallas_call(
        _cos_kernel,
        out_shape=jax.ShapeDtypeStruct((num_tiles, 1, tile_n), jnp.float32),
        grid_spec=pltpu.PrefetchScalarGridSpec(
            num_scalar_prefetch=0,
            grid=(num_tiles,),
            in_specs=[
                pl.BlockSpec((tile_n, d), lambda i: (i, 0)),
                pl.BlockSpec((tile_n, d), lambda i: (i, 0)),
            ],
            out_specs=pl.BlockSpec((1, 1, tile_n), lambda i: (i, 0, 0)),
        ),
        compiler_params=pltpu.CompilerParams(
            # Independent row tiles: shard across both TensorCores on v7x.
            dimension_semantics=("parallel",),
            # Above v5e's 16 MiB scoped default, within v7x's 64 MiB VMEM;
            # 2 inputs x 2 pipeline buffers x ~2 MiB tiles fit comfortably.
            vmem_limit_bytes=32 * 1024 * 1024,
        ),
    )(outputs, targets)

    cos = cos.reshape(n_pad)[:n]

    # TODO(synk): arccos / rad2deg on the N per-row scalars stay in the JAX
    # wrapper -- Mosaic has no guaranteed lowering for inverse-trig primitives.
    return jnp.degrees(jnp.arccos(cos))


def _cos_loss_ref(outputs, targets):
    """Pure-JAX reference mirroring the torch forward."""
    o = outputs / jnp.linalg.norm(outputs, ord=2, axis=1)[:, None]
    t = targets / jnp.linalg.norm(targets, ord=2, axis=1)[:, None]
    o = o.reshape(-1, o.shape[-1])
    t = t.reshape(-1, t.shape[-1])
    cos = jnp.sum(o * t, axis=-1)
    cos = jnp.clip(cos, -_CLIP, _CLIP)
    return jnp.degrees(jnp.arccos(cos))


if __name__ == "__main__":
    key = jax.random.PRNGKey(0)

    # (N, D, explicit tile_n or None for auto-sizing)
    checks = [
        (16, 32, None),  # small single-tile case, narrow features
        (13, 32, None),  # N not a multiple of 8 -> exercises row padding
        (48, 32, 16),    # multi-tile grid with an explicit tile override
    ]
    for idx, (N, D, tn) in enumerate(checks):
        k1, k2 = jax.random.split(jax.random.fold_in(key, idx))
        outputs = jax.random.normal(k1, (N, D), dtype=jnp.float32)
        targets = jax.random.normal(k2, (N, D), dtype=jnp.float32)

        loss = jax.block_until_ready(cos_loss(outputs, targets, tile_n=tn))
        ref = jax.block_until_ready(_cos_loss_ref(outputs, targets))

        assert loss.shape == (N,), (loss.shape, N)
        assert jnp.allclose(loss, ref, rtol=1e-4, atol=1e-3), (N, D, tn, loss, ref)

    print("KERNEL_OK")
</pallas_src>

<mosaic_0001>
module attributes {stable_mosaic.version = 11 : i64} {
  func.func @_cos_kernel(%arg0: i32, %arg1: memref<16x32xf32, #tpu.memory_space<vmem>>, %arg2: memref<16x32xf32, #tpu.memory_space<vmem>>, %arg3: memref<1x1x16xf32, #tpu.memory_space<vmem>>) attributes {dimension_semantics = [#tpu.dimension_semantics<parallel>], iteration_bounds = array<i64: 1>, scalar_prefetch = 0 : i64, scratch_operands = 0 : i64, tpu.core_type = #tpu.core_type<tc>, window_params = [{transform_indices = @transform_0, window_bounds = array<i64: 16, 32>}, {transform_indices = @transform_1, window_bounds = array<i64: 16, 32>}, {transform_indices = @transform_2, window_bounds = array<i64: 1, 1, 16>}]} {
    %c0 = arith.constant 0 : index
    %c0_0 = arith.constant 0 : index
    %0 = vector.load %arg1[%c0, %c0_0] : memref<16x32xf32, #tpu.memory_space<vmem>>, vector<16x32xf32>
    %c0_1 = arith.constant 0 : index
    %c0_2 = arith.constant 0 : index
    %1 = vector.load %arg2[%c0_1, %c0_2] : memref<16x32xf32, #tpu.memory_space<vmem>>, vector<16x32xf32>
    %2 = arith.mulf %0, %1 : vector<16x32xf32>
    %cst = arith.constant dense<0.000000e+00> : vector<16xf32>
    %3 = vector.multi_reduction <add>, %2, %cst [1] : vector<16x32xf32> to vector<16xf32>
    %4 = arith.mulf %0, %0 : vector<16x32xf32>
    %cst_3 = arith.constant dense<0.000000e+00> : vector<16xf32>
    %5 = vector.multi_reduction <add>, %4, %cst_3 [1] : vector<16x32xf32> to vector<16xf32>
    %6 = arith.mulf %1, %1 : vector<16x32xf32>
    %cst_4 = arith.constant dense<0.000000e+00> : vector<16xf32>
    %7 = vector.multi_reduction <add>, %6, %cst_4 [1] : vector<16x32xf32> to vector<16xf32>
    %8 = arith.mulf %5, %7 : vector<16xf32>
    %9 = math.rsqrt %8 : vector<16xf32>
    %10 = arith.mulf %3, %9 : vector<16xf32>
    %cst_5 = arith.constant -9.990000e-01 : f32
    %cst_6 = arith.constant 9.990000e-01 : f32
    %11 = vector.broadcast %cst_5 : f32 to vector<16xf32>
    %12 = arith.maximumf %11, %10 : vector<16xf32>
    %13 = vector.broadcast %cst_6 : f32 to vector<16xf32>
    %14 = arith.minimumf %13, %12 : vector<16xf32>
    %15 = vector.shape_cast %14 : vector<16xf32> to vector<1x1x16xf32>
    %c0_7 = arith.constant 0 : index
    %c0_8 = arith.constant 0 : index
    %c0_9 = arith.constant 0 : index
    %16 = vector.load %arg3[%c0_7, %c0_8, %c0_9] : memref<1x1x16xf32, #tpu.memory_space<vmem>>, vector<1x1x16xf32>
    tpu.vector_store %arg3[%c0_7, %c0_8, %c0_9], %15 {strides = array<i32>} : memref<1x1x16xf32, #tpu.memory_space<vmem>>, vector<1x1x16xf32>,
    return
  }
  func.func @transform_0(%arg0: i32) -> (i32, i32) {
    %c0_i32 = arith.constant 0 : i32
    %c0_i32_0 = arith.constant 0 : i32
    return %arg0, %c0_i32 : i32, i32
  }
  func.func @transform_1(%arg0: i32) -> (i32, i32) {
    %c0_i32 = arith.constant 0 : i32
    %c0_i32_0 = arith.constant 0 : i32
    return %arg0, %c0_i32 : i32, i32
  }
  func.func @transform_2(%arg0: i32) -> (i32, i32, i32) {
    %c0_i32 = arith.constant 0 : i32
    %c0_i32_0 = arith.constant 0 : i32
    %c0_i32_1 = arith.constant 0 : i32
    return %arg0, %c0_i32, %c0_i32_0 : i32, i32, i32
  }
}

</mosaic_0001>

<bundles_post_ra>
// kernel: tpu_custom_call.1
= control target key start
LH: loop header
LB: loop body
LE: loop exit
PB: predicated region body
PF: predicated region fallthrough
CT: control target
= control target key end

     0   :  { %7 = vsyncpa [#allocation3], 0  ;;  %s258_s0 = inlined_call_operand.hbm [shape: f32[16,32], index: 0, kind: input, shape index: {}]   ;;  %s259_s1 = inlined_call_operand.hbm [shape: f32[16,32], index: 1, kind: input, shape index: {}]   ;;  %s260_s2 = inlined_call_operand.hbm [shape: f32[1,1,16], index: 2, kind: output, shape index: {}]  }
   0x1   :  { %8 = vsyncpa [#allocation6], 0 }
   0x2   :  { %9 = vsyncpa [#allocation4], 0  ;;  %s196_s9 = smov [#allocation2]   ;;  %s124_s13 = scalar_lea.hbm %s258_s0, 256 }
   0x3   :  { %s15_s10 = sshll.u32 %s196_s9, 4  ;;  %p125_p0 = scmp.ne.s32.totalorder %s258_s0, %s124_s13  ;;  %s16_s10 = int_to_ptr.vmem [resolvable:$true] %s15_s10 }
   0x4   :  { %p128_p1 = scmp.lt.u32.totalorder %s124_s13, %s258_s0 }
   0x6   :  { %p130_p2 = pnand %p128_p1, %p125_p0 }
   0x8   :  { %133 = shalt.err (!%p130_p2)
}
   0x9   :  { %s134_s18 = scalar_lea.vmem %s16_s10, 256  ;;  %p139_p4 = scmp.lt.s32.totalorder %s16_s10, %s16_s10 }
   0xa   :  { %p135_p3 = scmp.ne.s32.totalorder %s16_s10, %s134_s18  ;;  %p140_p5 = scmp.lt.s32.totalorder %s134_s18, %s134_s18 }
   0xc   :  { %p141_p6 = por %p140_p5, %p139_p4 }
   0xe   :  { %p142_p7 = pnand %p141_p6, %p135_p3 }
  0x10   :  { %145 = shalt.err (!%p142_p7)
}
  0x11   :  { %s197_s19 = smov 128   ;;  %s198_s20 = smov 8  }
  0x12   :  { %21 = dma.hbm_to_vmem [thread:$0]  %s258_s0, 256, %s16_s10, [#allocation3], %s197_s19, %s197_s19, %s198_s20  }
  0x13   :  { %s199_s23 = smov [#allocation5]   ;;  %s146_s27 = scalar_lea.hbm %s259_s1, 256 }
  0x14   :  { %s27_s24 = sshll.u32 %s199_s23, 4  ;;  %p147_p8 = scmp.ne.s32.totalorder %s259_s1, %s146_s27  ;;  %s28_s24 = int_to_ptr.vmem [resolvable:$true] %s27_s24 }
  0x15   :  { %p150_p9 = scmp.lt.u32.totalorder %s146_s27, %s259_s1 }
  0x17   :  { %p152_p10 = pnand %p150_p9, %p147_p8 }
  0x19   :  { %155 = shalt.err (!%p152_p10)
}
  0x1a   :  { %s156_s4 = scalar_lea.vmem %s28_s24, 256  ;;  %p161_p12 = scmp.lt.s32.totalorder %s28_s24, %s28_s24 }
  0x1b   :  { %p157_p11 = scmp.ne.s32.totalorder %s28_s24, %s156_s4  ;;  %p162_p13 = scmp.lt.s32.totalorder %s156_s4, %s156_s4 }
  0x1d   :  { %p163_p0 = por %p162_p13, %p161_p12 }
  0x1f   :  { %p164_p1 = pnand %p163_p0, %p157_p11 }
  0x21   :  { %167 = shalt.err (!%p164_p1)
}
  0x22   :  { %33 = dma.hbm_to_vmem [thread:$0]  %s259_s1, 256, %s28_s24, [#allocation6], %s197_s19, %s197_s19, %s198_s20  }
  0x23   :  { %190 = dma.done.wait [#allocation3], 256  }
  0x24   :  { %191 = vsyncadd [#allocation3], 4294967040 }
  0x25   :  { %192 = dma.done.wait [#allocation6], 256  }
  0x26   :  { %193 = vsyncadd [#allocation6], 4294967040  ;;  %v42_v0 = vld [vmem:[#allocation5] sm:$0xff]  ;;  %vm46_vm0 = vcmask 261120   ;;  %v40_v1 = vld [vmem:[#allocation2] sm:$0xff]  ;;  %v81_v22 = vlaneseq  ;;  %s200_s1 = smov [#allocation7]  }
  0x27   :  { %v43_v2 = vld [vmem:[#allocation5 + $0x8] sm:$0xff]  ;;  %v61_v3 = vmul.f32 %v42_v0, %v42_v0  ;;  %v53_v4 = vmul.f32 %v40_v1, %v40_v1  ;;  %v41_v6 = vld [vmem:[#allocation2 + $0x8] sm:$0xff]  ;;  %v44_v12 = vmul.f32 %v42_v0, %v40_v1  ;;  %s103_s6 = sshll.u32 %s200_s1, 4  ;;  %vm92_vm1 = vcmask 130112   ;;  %s104_s6 = int_to_ptr.vmem [resolvable:$true] %s103_s6 }
  0x28   :  { %v62_v5 = vmul.f32 %v43_v2, %v43_v2  ;;  %v54_v7 = vmul.f32 %v41_v6, %v41_v6  ;;  %v45_v13 = vmul.f32 %v43_v2, %v41_v6  ;;  %v82_v24 = vand.u32 127, %v81_v22  ;;  %s168_s7 = scalar_lea.vmem %s104_s6, 16  ;;  %s172_s8 = scalar_lea.vmem %s104_s6, 32 }
  0x29   :  { %v63_v8 = vsel %vm46_vm0, %v61_v3, 0.0  ;;  %v55_v9 = vsel %vm46_vm0, %v53_v4, 0.0  ;;  %v47_v14 = vsel %vm46_vm0, %v44_v12, 0.0  ;;  %v84_v26 = vshrl.u32 %v81_v22, 7  ;;  %p169_p2 = scmp.ne.s32.totalorder %s104_s6, %s168_s7  ;;  %p173_p3 = scmp.lt.s32.totalorder %s104_s6, %s104_s6 }
  0x2a   :  { %64 = vadd.xlane.f32.xlu1 %v63_v8  ;;  %56 = vadd.xlane.f32.xlu0 %v55_v9  ;;  %v66_v10 = vsel %vm46_vm0, %v62_v5, 0.0  ;;  %v58_v11 = vsel %vm46_vm0, %v54_v7, 0.0  ;;  %v50_v15 = vsel %vm46_vm0, %v45_v13, 0.0  ;;  %v87_v28 = vadd.s32 4294967288, %v82_v24  ;;  %p174_p4 = scmp.lt.s32.totalorder %s172_s8, %s168_s7 }
  0x2b   :  { %v85_v31 = vsub.s32 %v82_v24, %v84_v26  ;;  %vm95_vm2 = vcmask 122880  }
  0x2c   :  { %v90_v33 = vsub.s32 %v87_v28, %v84_v26  ;;  %p175_p5 = por %p174_p4, %p173_p3 }
  0x2e   :  { %67 = vadd.xlane.f32.xlu1 %v66_v10  ;;  %59 = vadd.xlane.f32.xlu0 %v58_v11  ;;  %p176_p6 = pnand %p175_p5, %p169_p2 }
  0x32   :  { %48 = vadd.xlane.f32.xlu0 %v47_v14  ;;  %51 = vadd.xlane.f32.xlu1 %v50_v15 }
  0xb7   :  { %v65_v16 = vpop.xlane.xlu1 %64  ;;  %v57_v17 = vpop.xlane.xlu0 %56 }
  0xb8   :  { %v69_v18 = vmul.f32 %v65_v16, %v57_v17 }
  0xba   :  { %120 = vrsqrt.f32 %v69_v18 }
  0xbb   :  { %v68_v19 = vpop.xlane.xlu1 %67  ;;  %v60_v20 = vpop.xlane.xlu0 %59 }
  0xbc   :  { %v70_v21 = vmul.f32 %v68_v19, %v60_v20 }
  0xbe   :  { %122 = vrsqrt.f32 %v70_v21 }
  0xbf   :  { %v49_v23 = vpop.xlane.xlu0 %48  ;;  %v52_v29 = vpop.xlane.xlu1 %51 }
  0xc4   :  { %v121_v25 = vpop.eup %120 }
  0xc5   :  { %v73_v27 = vmul.f32 %v121_v25, %v49_v23 }
  0xc7   :  { %v113_v32 = vclamps-f32 %v73_v27, 0.999 }
  0xc8   :  { %v123_v30 = vpop.eup %122 }
  0xc9   :  { %v74_v34 = vmul.f32 %v123_v30, %v52_v29  ;;  %v86_v36 = vrot.slane %v113_v32, %v85_v31 }
  0xcb   :  { %v114_v35 = vclamps-f32 %v74_v34, 0.999 }
  0xcd   :  { %v91_v37 = vrot.slane %v114_v35, %v90_v33 }
  0xcf   :  { %v93_v38 = vsel %vm92_vm1, %v91_v37, %v86_v36 }
  0xd0   :  { %96 = vst.msk [vmem:[#allocation7] sm:$0x1] %vm95_vm2, %v93_v38 }
  0xd1   :  { %179 = shalt.err (!%p176_p6)
}
  0xd2   :  { %s180_s11 = scalar_lea.hbm %s260_s2, 16 }
  0xd3   :  { %p181_p7 = scmp.ne.s32.totalorder %s260_s2, %s180_s11  ;;  %p184_p8 = scmp.lt.u32.totalorder %s180_s11, %s260_s2 }
  0xd5   :  { %p186_p9 = pnand %p184_p8, %p181_p7 }
  0xd7   :  { %189 = shalt.err (!%p186_p9)
}
  0xd8   :  { %106 = dma.vmem_to_hbm [thread:$0]  %s104_s6, 16, %s260_s2, [#allocation4]  }
  0xd9   :  { %194 = dma.done.wait [#allocation4], 16  }
  0xda   :  { %195 = vsyncadd [#allocation4], 4294967280 }
  0xdb   :  { %110 = vsyncpa [#allocation3], 1 }
  0xdc   :  { %111 = vsyncpa [#allocation6], 1 }
  0xdd   :  { %112 = vsyncpa [#allocation4], 1 }

</bundles_post_ra>
